<compile_context>
chip_gen: v7x
topology: tpu7x:2x2x1
jax: 0.10.0
libtpu: 0.0.40
codegen_flags: <defaults>
</compile_context>

<pallas_src>
import functools

import jax
import jax.numpy as jnp
from jax.experimental import pallas as pl
from jax.experimental.pallas import tpu as pltpu

_LANE = 128
_SUBLANE = 8


def _round_up(n, m):
    return ((n + m - 1) // m) * m


def _pick_activation_dtype():
    """bf16 bias+tanh on chips with a bf16 VPU/EUP (v6e/v7x); f32 otherwise (v5e)."""
    try:
        kind = jax.devices()[0].device_kind.lower()
    except Exception:
        return jnp.float32
    if ("v6" in kind) or ("v7" in kind) or ("7x" in kind):
        return jnp.bfloat16
    return jnp.float32


def _policy_kernel(x_ref, w1_ref, b1_ref, w2_ref, b2_ref, w3_ref, b3_ref,
                   mu_ref, *, act_dtype):
    # In-kernel f32 -> bf16 cast of the batch tile (cheap VPU op, hidden under DMA).
    x = x_ref[...].astype(w1_ref.dtype)

    # fc1 + tanh  (bf16 operands -> f32 MXU accumulate; bias/tanh in act_dtype)
    h1 = jnp.dot(x, w1_ref[...], preferred_element_type=jnp.float32)
    h1 = jnp.tanh(h1.astype(act_dtype) + b1_ref[...].astype(act_dtype))

    # fc2 + tanh
    h2 = jnp.dot(h1.astype(w2_ref.dtype), w2_ref[...],
                 preferred_element_type=jnp.float32)
    h2 = jnp.tanh(h2.astype(act_dtype) + b2_ref[...].astype(act_dtype))

    # fc2_mu + tanh  (W3 has only action_dim columns -> no padded output lanes)
    mu = jnp.dot(h2.astype(w3_ref.dtype), w3_ref[...],
                 preferred_element_type=jnp.float32)
    mu = jnp.tanh(mu.astype(act_dtype) + b3_ref[...].astype(act_dtype))
    mu_ref[...] = mu.astype(mu_ref.dtype)


def init_policy_params(key, state_dim, action_dim, hidden_dim=64):
    """f32 params mimicking nn.Linear default init. Weights are (in, out)."""
    def linear(key, fan_in, fan_out):
        kw, kb = jax.random.split(key)
        bound = 1.0 / jnp.sqrt(fan_in)
        W = jax.random.uniform(kw, (fan_in, fan_out), jnp.float32, -bound, bound)
        b = jax.random.uniform(kb, (fan_out,), jnp.float32, -bound, bound)
        return W, b

    k1, k2, k3 = jax.random.split(key, 3)
    W1, b1 = linear(k1, state_dim, hidden_dim)
    W2, b2 = linear(k2, hidden_dim, hidden_dim // 2)
    W3, b3 = linear(k3, hidden_dim // 2, action_dim)
    return {"W1": W1, "b1": b1, "W2": W2, "b2": b2, "W3": W3, "b3": b3}


def pack_params(params, compute_dtype=jnp.bfloat16):
    """Pad hidden lane dims to 128, cast matmul operands to `compute_dtype`.
    The final weight keeps its natural action_dim column count (narrow output).
    Biases stay f32 (cast in-kernel to the activation dtype)."""
    W1, b1 = params["W1"], params["b1"]
    W2, b2 = params["W2"], params["b2"]
    W3, b3 = params["W3"], params["b3"]

    s, h1 = W1.shape
    h2 = W2.shape[1]
    a = W3.shape[1]

    h1p = _round_up(h1, _LANE)
    h2p = _round_up(h2, _LANE)

    def pad_w(w, rows, cols):
        return jnp.pad(w, ((0, rows - w.shape[0]), (0, cols - w.shape[1])))

    def row_b(b, cols):
        b = jnp.reshape(b, (1, -1)).astype(jnp.float32)
        return jnp.pad(b, ((0, 0), (0, cols - b.shape[1])))

    return {
        "W1": pad_w(W1, s, h1p).astype(compute_dtype),     # (s, 128)
        "b1": row_b(b1, h1p),                              # (1, 128) f32
        "W2": pad_w(W2, h1p, h2p).astype(compute_dtype),   # (128, 128)
        "b2": row_b(b2, h2p),                              # (1, 128) f32
        "W3": pad_w(W3, h2p, a).astype(compute_dtype),     # (128, a)
        "b3": row_b(b3, a),                                # (1, a) f32
        "state_dim": s,
        "action_dim": a,
    }


def policy_forward(x, packed, *, tb=4096, out_dtype=jnp.bfloat16,
                   activation_dtype=None):
    """x: (B, state_dim) f32; packed: output of pack_params.
    Returns (B, action_dim) in `out_dtype` (bf16 by default)."""
    W1, b1 = packed["W1"], packed["b1"]
    W2, b2 = packed["W2"], packed["b2"]
    W3, b3 = packed["W3"], packed["b3"]
    action_dim = packed["action_dim"]

    B, s = x.shape
    assert s == packed["state_dim"], "state_dim mismatch"
    h1p, h2p = W1.shape[1], W2.shape[1]

    if activation_dtype is None:
        activation_dtype = _pick_activation_dtype()

    # Batch tile: multiple of 8; no batch padding (ragged last block handled by
    # Pallas OOB semantics -- rows are independent in this kernel).
    tb_eff = min(_round_up(tb, _SUBLANE), _round_up(B, _SUBLANE))
    grid = (pl.cdiv(B, tb_eff),)
    vmem = pltpu.MemorySpace.VMEM

    x_spec = pl.BlockSpec((tb_eff, s), lambda i: (i, 0), memory_space=vmem)
    out_spec = pl.BlockSpec((tb_eff, action_dim), lambda i: (i, 0),
                            memory_space=vmem)

    def resident(arr):  # constant block index -> stays in VMEM across steps
        return pl.BlockSpec(arr.shape, lambda i: (0, 0), memory_space=vmem)

    flops = 2 * B * (s * h1p + h1p * h2p + h2p * action_dim)
    transcendentals = B * (h1p + h2p + action_dim)
    bytes_accessed = int(
        x.size * x.dtype.itemsize
        + sum(a.size * a.dtype.itemsize for a in (W1, b1, W2, b2, W3, b3))
        + B * action_dim * jnp.dtype(out_dtype).itemsize
    )

    kernel = functools.partial(_policy_kernel, act_dtype=activation_dtype)

    mu = pl.pallas_call(
        kernel,
        out_shape=jax.ShapeDtypeStruct((B, action_dim), out_dtype),
        grid=grid,
        in_specs=[x_spec, resident(W1), resident(b1), resident(W2),
                  resident(b2), resident(W3), resident(b3)],
        out_specs=out_spec,
        compiler_params=pltpu.CompilerParams(dimension_semantics=("parallel",)),
        cost_estimate=pl.CostEstimate(flops=flops,
                                      transcendentals=transcendentals,
                                      bytes_accessed=bytes_accessed),
    )(x, W1, b1, W2, b2, W3, b3)

    return mu


def policy_reference(x, p):
    h1 = jnp.tanh(x @ p["W1"] + p["b1"])
    h2 = jnp.tanh(h1 @ p["W2"] + p["b2"])
    return jnp.tanh(h2 @ p["W3"] + p["b3"])


if __name__ == "__main__":
    state_dim, action_dim, hidden_dim = 16, 8, 64

    key = jax.random.PRNGKey(0)
    k_params, k_x1, k_x2 = jax.random.split(key, 3)
    params = init_policy_params(k_params, state_dim, action_dim, hidden_dim)
    packed = pack_params(params)  # bf16 matmul operands, lane-padded hiddens

    # Small single-block case (batch=2, block bigger than the batch).
    x = jax.random.normal(k_x1, (2, state_dim), jnp.float32)
    mu = jax.block_until_ready(policy_forward(x, packed))
    ref = policy_reference(x, params)
    assert mu.shape == (2, action_dim)
    err = float(jnp.max(jnp.abs(mu.astype(jnp.float32) - ref)))
    assert jnp.allclose(mu.astype(jnp.float32), ref, atol=4e-2, rtol=4e-2), err

    # Multi-step ragged grid case (batch=300, tb=128 -> 3 parallel steps,
    # last block partially out of bounds; no padding copies).
    x_big = jax.random.normal(k_x2, (300, state_dim), jnp.float32)
    mu_big = jax.block_until_ready(policy_forward(x_big, packed, tb=128))
    ref_big = policy_reference(x_big, params)
    assert mu_big.shape == (300, action_dim)
    err_big = float(jnp.max(jnp.abs(mu_big.astype(jnp.float32) - ref_big)))
    assert jnp.allclose(mu_big.astype(jnp.float32), ref_big,
                        atol=4e-2, rtol=4e-2), err_big

    print("KERNEL_OK")
</pallas_src>

<mosaic_0001>
module attributes {stable_mosaic.version = 11 : i64} {
  func.func @_policy_kernel(%arg0: i32, %arg1: memref<8x16xf32, #tpu.memory_space<vmem>>, %arg2: memref<16x128xbf16, #tpu.memory_space<vmem>>, %arg3: memref<1x128xf32, #tpu.memory_space<vmem>>, %arg4: memref<128x128xbf16, #tpu.memory_space<vmem>>, %arg5: memref<1x128xf32, #tpu.memory_space<vmem>>, %arg6: memref<128x8xbf16, #tpu.memory_space<vmem>>, %arg7: memref<1x8xf32, #tpu.memory_space<vmem>>, %arg8: memref<8x8xbf16, #tpu.memory_space<vmem>>) attributes {dimension_semantics = [#tpu.dimension_semantics<parallel>], iteration_bounds = array<i64: 1>, scalar_prefetch = 0 : i64, scratch_operands = 0 : i64, tpu.core_type = #tpu.core_type<tc>, window_params = [{transform_indices = @transform_0, window_bounds = array<i64: 8, 16>}, {pipeline_mode = #tpu.pipeline_mode<synchronous>, transform_indices = @transform_1, window_bounds = array<i64: 16, 128>}, {pipeline_mode = #tpu.pipeline_mode<synchronous>, transform_indices = @transform_2, window_bounds = array<i64: 1, 128>}, {pipeline_mode = #tpu.pipeline_mode<synchronous>, transform_indices = @transform_3, window_bounds = array<i64: 128, 128>}, {pipeline_mode = #tpu.pipeline_mode<synchronous>, transform_indices = @transform_4, window_bounds = array<i64: 1, 128>}, {pipeline_mode = #tpu.pipeline_mode<synchronous>, transform_indices = @transform_5, window_bounds = array<i64: 128, 8>}, {pipeline_mode = #tpu.pipeline_mode<synchronous>, transform_indices = @transform_6, window_bounds = array<i64: 1, 8>}, {transform_indices = @transform_7, window_bounds = array<i64: 8, 8>}]} {
    %c0 = arith.constant 0 : index
    %c0_0 = arith.constant 0 : index
    %0 = vector.load %arg1[%c0, %c0_0] : memref<8x16xf32, #tpu.memory_space<vmem>>, vector<8x16xf32>
    %1 = arith.truncf %0 : vector<8x16xf32> to vector<8x16xbf16>
    %c0_1 = arith.constant 0 : index
    %c0_2 = arith.constant 0 : index
    %2 = vector.load %arg2[%c0_1, %c0_2] : memref<16x128xbf16, #tpu.memory_space<vmem>>, vector<16x128xbf16>
    %cst = arith.constant dense<0.000000e+00> : vector<8x128xf32>
    %3 = tpu.matmul %1, %2, %cst {dimension_numbers = #tpu.dot_dimension_numbers<[1], [0], [0], [1], [0, 0, 1, 1], [], []>} : vector<8x16xbf16>, vector<16x128xbf16>, vector<8x128xf32> -> vector<8x128xf32>
    %c0_3 = arith.constant 0 : index
    %c0_4 = arith.constant 0 : index
    %4 = vector.load %arg3[%c0_3, %c0_4] : memref<1x128xf32, #tpu.memory_space<vmem>>, vector<1x128xf32>
    %5 = vector.broadcast %4 : vector<1x128xf32> to vector<8x128xf32>
    %6 = arith.addf %3, %5 : vector<8x128xf32>
    %7 = math.tanh %6 : vector<8x128xf32>
    %8 = arith.truncf %7 : vector<8x128xf32> to vector<8x128xbf16>
    %c0_5 = arith.constant 0 : index
    %c0_6 = arith.constant 0 : index
    %9 = vector.load %arg4[%c0_5, %c0_6] : memref<128x128xbf16, #tpu.memory_space<vmem>>, vector<128x128xbf16>
    %cst_7 = arith.constant dense<0.000000e+00> : vector<8x128xf32>
    %10 = tpu.matmul %8, %9, %cst_7 {dimension_numbers = #tpu.dot_dimension_numbers<[1], [0], [0], [1], [0, 0, 1, 1], [], []>} : vector<8x128xbf16>, vector<128x128xbf16>, vector<8x128xf32> -> vector<8x128xf32>
    %c0_8 = arith.constant 0 : index
    %c0_9 = arith.constant 0 : index
    %11 = vector.load %arg5[%c0_8, %c0_9] : memref<1x128xf32, #tpu.memory_space<vmem>>, vector<1x128xf32>
    %12 = vector.broadcast %11 : vector<1x128xf32> to vector<8x128xf32>
    %13 = arith.addf %10, %12 : vector<8x128xf32>
    %14 = math.tanh %13 : vector<8x128xf32>
    %15 = arith.truncf %14 : vector<8x128xf32> to vector<8x128xbf16>
    %c0_10 = arith.constant 0 : index
    %c0_11 = arith.constant 0 : index
    %16 = vector.load %arg6[%c0_10, %c0_11] : memref<128x8xbf16, #tpu.memory_space<vmem>>, vector<128x8xbf16>
    %cst_12 = arith.constant dense<0.000000e+00> : vector<8x8xf32>
    %17 = tpu.matmul %15, %16, %cst_12 {dimension_numbers = #tpu.dot_dimension_numbers<[1], [0], [0], [1], [0, 0, 1, 1], [], []>} : vector<8x128xbf16>, vector<128x8xbf16>, vector<8x8xf32> -> vector<8x8xf32>
    %c0_13 = arith.constant 0 : index
    %c0_14 = arith.constant 0 : index
    %18 = vector.load %arg7[%c0_13, %c0_14] : memref<1x8xf32, #tpu.memory_space<vmem>>, vector<1x8xf32>
    %19 = vector.broadcast %18 : vector<1x8xf32> to vector<8x8xf32>
    %20 = arith.addf %17, %19 : vector<8x8xf32>
    %21 = math.tanh %20 : vector<8x8xf32>
    %22 = arith.truncf %21 : vector<8x8xf32> to vector<8x8xbf16>
    %c0_15 = arith.constant 0 : index
    %c0_16 = arith.constant 0 : index
    %23 = vector.load %arg8[%c0_15, %c0_16] : memref<8x8xbf16, #tpu.memory_space<vmem>>, vector<8x8xbf16>
    tpu.vector_store %arg8[%c0_15, %c0_16], %22 {strides = array<i32>} : memref<8x8xbf16, #tpu.memory_space<vmem>>, vector<8x8xbf16>,
    return
  }
  func.func @transform_0(%arg0: i32) -> (i32, i32) {
    %c0_i32 = arith.constant 0 : i32
    %c0_i32_0 = arith.constant 0 : i32
    return %arg0, %c0_i32 : i32, i32
  }
  func.func @transform_1(%arg0: i32) -> (i32, i32) {
    %c0_i32 = arith.constant 0 : i32
    %c0_i32_0 = arith.constant 0 : i32
    %c0_i32_1 = arith.constant 0 : i32
    return %c0_i32, %c0_i32_0 : i32, i32
  }
  func.func @transform_2(%arg0: i32) -> (i32, i32) {
    %c0_i32 = arith.constant 0 : i32
    %c0_i32_0 = arith.constant 0 : i32
    %c0_i32_1 = arith.constant 0 : i32
    return %c0_i32, %c0_i32_0 : i32, i32
  }
  func.func @transform_3(%arg0: i32) -> (i32, i32) {
    %c0_i32 = arith.constant 0 : i32
    %c0_i32_0 = arith.constant 0 : i32
    %c0_i32_1 = arith.constant 0 : i32
    return %c0_i32, %c0_i32_0 : i32, i32
  }
  func.func @transform_4(%arg0: i32) -> (i32, i32) {
    %c0_i32 = arith.constant 0 : i32
    %c0_i32_0 = arith.constant 0 : i32
    %c0_i32_1 = arith.constant 0 : i32
    return %c0_i32, %c0_i32_0 : i32, i32
  }
  func.func @transform_5(%arg0: i32) -> (i32, i32) {
    %c0_i32 = arith.constant 0 : i32
    %c0_i32_0 = arith.constant 0 : i32
    %c0_i32_1 = arith.constant 0 : i32
    return %c0_i32, %c0_i32_0 : i32, i32
  }
  func.func @transform_6(%arg0: i32) -> (i32, i32) {
    %c0_i32 = arith.constant 0 : i32
    %c0_i32_0 = arith.constant 0 : i32
    %c0_i32_1 = arith.constant 0 : i32
    return %c0_i32, %c0_i32_0 : i32, i32
  }
  func.func @transform_7(%arg0: i32) -> (i32, i32) {
    %c0_i32 = arith.constant 0 : i32
    %c0_i32_0 = arith.constant 0 : i32
    return %arg0, %c0_i32 : i32, i32
  }
}

</mosaic_0001>

<bundles_post_ra>
// kernel: tpu_custom_call.1
= control target key start
LH: loop header
LB: loop body
LE: loop exit
PB: predicated region body
PF: predicated region fallthrough
CT: control target
= control target key end

     0   :  { %12 = vsyncpa [#allocation3], 0  ;;  %v507_v1 = vmov 0.0   ;;  %vm45_vm0 = vcmask 130048   ;;  %vm508_vm1 = vmmov 0   ;;  %v321_v44 = vlaneseq  ;;  %s648_s0 = inlined_call_operand.vmem [shape: f32[2,16], index: 0, kind: input, shape index: {}]   ;;  %s649_s1 = inlined_call_operand.vmem [shape: bf16[16,128], index: 1, kind: input, shape index: {}]   ;;  %s650_s2 = inlined_call_operand.vmem [shape: f32[1,128], index: 2, kind: input, shape index: {}]   ;;  %s651_s3 = inlined_call_operand.vmem [shape: bf16[128,128], index: 3, kind: input, shape index: {}]   ;;  %s652_s4 = inlined_call_operand.vmem [shape: f32[1,128], index: 4, kind: input, shape index: {}]   ;;  %s653_s5 = inlined_call_operand.vmem [shape: bf16[128,8], index: 5, kind: input, shape index: {}]   ;;  %s654_s6 = inlined_call_operand.vmem [shape: f32[1,8], index: 6, kind: input, shape index: {}]   ;;  %s655_s7 = inlined_call_operand.hbm [shape: bf16[2,8], index: 7, kind: output, shape index: {}]  }
   0x1   :  { %v460_v0 = vld [vmem:[%s649_s1] sm:$0xff]   ;;  %408 = vmatprep.subr.bf16.mxu0 %v507_v1  ;;  %414 = vmatprep.subr.bf16.mxu1 %v507_v1  ;;  %v462_v5 = vld [vmem:[%s651_s3 + $0x8] sm:$0xff]   ;;  %v463_v6 = vld [vmem:[%s651_s3 + $0x10] sm:$0xff]   ;;  %v509_v42 = vmov 1966171168   ;;  %vm346_vm2 = vcmask 57344  }
   0x2   :  { %v28_v2 = vld [vmem:[%s648_s0] sm:$0xff]  ;;  %409 = vmatpush3.bf16.msra.mxu0 %v460_v0  ;;  %410 = vmatprep.mubr.msk.bf16.mxu0 %vm508_vm1, %v507_v1  ;;  %v464_v7 = vld [vmem:[%s651_s3 + $0x18] sm:$0xff]   ;;  %v466_v9 = vld [vmem:[%s651_s3 + $0x28] sm:$0xff]   ;;  %v319_v43 = vunpack.c.l.s4 %v509_v42  ;;  %v322_v46 = vshrl.u32 %v321_v44, 7 }
   0x3   :  { %v461_v3 = vld [vmem:[%s651_s3] sm:$0xff]   ;;  %v29_v4 = vpack.c.bf16 %v28_v2, %v28_v2  ;;  %430 = vmatprep.mubr.msk.bf16.mxu1 %vm508_vm1, %v507_v1  ;;  %434 = vmatprep.subr.bf16.mxu0 %v507_v1  ;;  %v467_v10 = vld [vmem:[%s651_s3 + $0x30] sm:$0xff]   ;;  %v468_v11 = vld [vmem:[%s651_s3 + $0x38] sm:$0xff]  }
   0x4   :  { %415 = vmatpush3.bf16.msra.mxu1 %v461_v3  ;;  %v465_v8 = vld [vmem:[%s651_s3 + $0x20] sm:$0xff]   ;;  %v470_v13 = vld [vmem:[%s653_s5 + $0x8] sm:$0xff]   ;;  %v471_v14 = vld [vmem:[%s653_s5 + $0x10] sm:$0xff]   ;;  %v320_v45 = vunpack.c.0.s8 %v319_v43 }
   0x5   :  { %416 = vmatprep.subr.bf16.mxu1 %v507_v1  ;;  %411 = vmatmul.mubr.msk.bf16.vlgmr.msra.gmra.mrb[0].mxu0 %vm45_vm0, %v29_v4  ;;  %v469_v12 = vld [vmem:[%s653_s5] sm:$0xff]   ;;  %v472_v15 = vld [vmem:[%s653_s5 + $0x18] sm:$0xff]   ;;  %v474_v25 = vld [vmem:[%s653_s5 + $0x28] sm:$0xff]  }
   0x6   :  { %450 = vmatprep.mubr.msk.bf16.mxu0 %vm508_vm1, %v507_v1  ;;  %435 = vmatpush3.bf16.msra.mxu0 %v469_v12  ;;  %v367_v16 = vld [vmem:[%s650_s2] ss:$0 sm:$0xff]  ;;  %v475_v26 = vld [vmem:[%s653_s5 + $0x30] sm:$0xff]   ;;  %v476_v27 = vld [vmem:[%s653_s5 + $0x38] sm:$0xff]   ;;  %v323_v47 = vsub.s32 %v320_v45, %v322_v46 }
   0x7   :  { %436 = vmatprep.subr.bf16.mxu0 %v507_v1  ;;  %v473_v24 = vld [vmem:[%s653_s5 + $0x20] sm:$0xff]  }
   0x8   :  { %417 = vmatpush3.bf16.msra.mxu1 %v462_v5  ;;  %v370_v28 = vld [vmem:[%s652_s4] ss:$0 sm:$0xff] }
   0x9   :  { %418 = vmatprep.subr.bf16.mxu1 %v507_v1  ;;  %v379_v36 = vld [vmem:[%s654_s6] ss:$0 sm:$0xff] }
   0xa   :  { %437 = vmatpush3.bf16.msra.mxu0 %v470_v13 }
   0xb   :  { %438 = vmatprep.subr.bf16.mxu0 %v507_v1 }
   0xc   :  { %419 = vmatpush3.bf16.msra.mxu1 %v463_v6 }
   0xd   :  { %420 = vmatprep.subr.bf16.mxu1 %v507_v1 }
   0xe   :  { %439 = vmatpush3.bf16.msra.mxu0 %v471_v14 }
   0xf   :  { %440 = vmatprep.subr.bf16.mxu0 %v507_v1 }
  0x10   :  { %421 = vmatpush3.bf16.msra.mxu1 %v464_v7 }
  0x11   :  { %422 = vmatprep.subr.bf16.mxu1 %v507_v1 }
  0x12   :  { %441 = vmatpush3.bf16.msra.mxu0 %v472_v15 }
  0x13   :  { %442 = vmatprep.subr.bf16.mxu0 %v507_v1 }
  0x14   :  { %423 = vmatpush3.bf16.msra.mxu1 %v465_v8 }
  0x15   :  { %424 = vmatprep.subr.bf16.mxu1 %v507_v1 }
  0x16   :  { %443 = vmatpush3.bf16.msra.mxu0 %v473_v24 }
  0x17   :  { %444 = vmatprep.subr.bf16.mxu0 %v507_v1 }
  0x18   :  { %425 = vmatpush3.bf16.msra.mxu1 %v466_v9 }
  0x19   :  { %426 = vmatprep.subr.bf16.mxu1 %v507_v1 }
  0x1a   :  { %445 = vmatpush3.bf16.msra.mxu0 %v474_v25 }
  0x1b   :  { %446 = vmatprep.subr.bf16.mxu0 %v507_v1 }
  0x1c   :  { %427 = vmatpush3.bf16.msra.mxu1 %v467_v10 }
  0x1d   :  { %428 = vmatprep.subr.bf16.mxu1 %v507_v1 }
  0x1e   :  { %447 = vmatpush3.bf16.msra.mxu0 %v475_v26 }
  0x1f   :  { %448 = vmatprep.subr.bf16.mxu0 %v507_v1 }
  0x20   :  { %429 = vmatpush3.bf16.msra.mxu1 %v468_v11 }
  0x22   :  { %449 = vmatpush3.bf16.msra.mxu0 %v476_v27 }
  0xd8   :  { %v83_v17 = vpop.f32.mrb[0].mxu0 }
  0xd9   :  { %v84_v18 = vadd.f32 %v367_v16, %v83_v17  ;;  %v412_v19 = vpop.f32.mrb[1].mxu0 }
  0xda   :  { %v86_v20 = vpop.f32.mrb[2].mxu0 }
  0xdb   :  { %477 = vtanh.f32 %v84_v18  ;;  %v413_v21 = vpop.f32.mrb[3].mxu0 }
  0xe5   :  { %v478_v22 = vpop.eup %477 }
  0xe6   :  { %v90_v23 = vpack.c.bf16 %v478_v22, %v478_v22 }
  0xe8   :  { %431 = vmatmul.mubr.bf16.vlgmr.msra.gmra.mrb[0].mxu1 %v90_v23 }
 0x1bb   :  { %v196_v29 = vpop.f32.mrb[0].mxu1 }
 0x1bc   :  { %v197_v30 = vadd.f32 %v370_v28, %v196_v29  ;;  %v432_v31 = vpop.f32.mrb[1].mxu1 }
 0x1bd   :  { %v199_v32 = vpop.f32.mrb[2].mxu1 }
 0x1be   :  { %479 = vtanh.f32 %v197_v30  ;;  %v433_v33 = vpop.f32.mrb[3].mxu1 }
 0x1c8   :  { %v480_v34 = vpop.eup %479 }
 0x1c9   :  { %v203_v35 = vpack.c.bf16 %v480_v34, %v480_v34 }
 0x1cb   :  { %451 = vmatmul.mubr.bf16.vlgmr.msra.gmra.mrb[4].mxu0 %v203_v35 }
 0x29e   :  { %v309_v37 = vpop.f32.mrb[4].mxu0 }
 0x29f   :  { %v310_v38 = vadd.f32 %v379_v36, %v309_v37  ;;  %v452_v39 = vpop.f32.mrb[5].mxu0 }
 0x2a0   :  { %v312_v40 = vpop.f32.mrb[6].mxu0 }
 0x2a1   :  { %481 = vtanh.f32 %v310_v38  ;;  %v453_v41 = vpop.f32.mrb[7].mxu0 }
 0x2ab   :  { %v482_v48 = vpop.eup %481 }
 0x2ac   :  { %v316_v49 = vpack.c.bf16 %v482_v48, %v482_v48 }
 0x2ae   :  { %v324_v50 = vrot.slane %v316_v49, %v323_v47 }
 0x2b0   :  { %v325_v51 = vcombine.high %v324_v50, %v324_v50  ;;  %v332_v52 = vrot.slane %v324_v50, %v323_v47 }
 0x2b2   :  { %v339_v53 = vrot.slane %v325_v51, %v323_v47  ;;  %v340_v54 = vcombine.high %v332_v52, %v332_v52  ;;  %347 = vst.msk [vmem:[#allocation2] sm:$0x1] %vm346_vm2, %v332_v52 }
 0x2b4   :  { %v341_v55 = vcombine.high %v339_v53, %v339_v53  ;;  %348 = vst.msk [vmem:[#allocation2 + $0x1] sm:$0x1] %vm346_vm2, %v339_v53  ;;  %349 = vst.msk [vmem:[#allocation2 + $0x2] sm:$0x1] %vm346_vm2, %v340_v54 }
 0x2b6   :  { %350 = vst.msk [vmem:[#allocation2 + $0x3] sm:$0x1] %vm346_vm2, %v341_v55 }
 0x2b7   :  { %355 = vsyncadd [#allocation3], 48  ;;  %s510_s4 = smov [#allocation2]  }
 0x2b8   :  { %s356_s5 = sshll.u32 %s510_s4, 4  ;;  %s357_s5 = int_to_ptr.vmem [resolvable:$true] %s356_s5 }
 0x2b9   :  { %s483_s6 = scalar_lea.vmem %s357_s5, 16  ;;  %s487_s14 = scalar_lea.vmem %s357_s5, 64 }
 0x2ba   :  { %p484_p0 = scmp.ne.s32.totalorder %s357_s5, %s483_s6  ;;  %p488_p1 = scmp.lt.s32.totalorder %s357_s5, %s357_s5 }
 0x2bb   :  { %p489_p2 = scmp.lt.s32.totalorder %s487_s14, %s483_s6 }
 0x2bd   :  { %p490_p3 = por %p489_p2, %p488_p1 }
 0x2bf   :  { %p491_p4 = pnand %p490_p3, %p484_p0 }
 0x2c1   :  { %494 = shalt.err (!%p491_p4)
}
 0x2c2   :  { %s495_s17 = scalar_lea.hbm %s655_s7, 16 }
 0x2c3   :  { %p496_p5 = scmp.ne.s32.totalorder %s655_s7, %s495_s17  ;;  %p499_p6 = scmp.lt.u32.totalorder %s495_s17, %s655_s7 }
 0x2c5   :  { %p501_p7 = pnand %p499_p6, %p496_p5 }
 0x2c7   :  { %504 = shalt.err (!%p501_p7)
}
 0x2c8   :  { %s511_s22 = smov 16   ;;  %s512_s23 = smov 1  }
 0x2c9   :  { %362 = dma.vmem_to_hbm [thread:$0]  %s357_s5, 16, %s655_s7, [#allocation3], %s511_s22, %s511_s22, %s512_s23  }
 0x2ca   :  { %505 = dma.done.wait [#allocation3], 64  }
 0x2cb   :  { %506 = vsyncadd [#allocation3], 4294967232 }
 0x2cc   :  { %366 = vsyncpa [#allocation3], 1 }

</bundles_post_ra>
